<compile_context>
chip_gen: v5e
topology: v5e:2x2
jax: 0.10.0
libtpu: 0.0.40
codegen_flags: <defaults>
</compile_context>

<pallas_src>
import jax
import jax.numpy as jnp
from jax.experimental import pallas as pl
from jax.experimental.pallas import tpu as pltpu

_SIGMA = 3.0
_SIGMA_SQR = _SIGMA ** 2.0
_INV_SIGMA_SQR = 1.0 / _SIGMA_SQR
_THRES = 1.0 / _SIGMA_SQR

_LANE = 128
_VMEM_TARGET_BYTES_PER_BUF = 4 * 1024 * 1024  # ~4 MiB per input/output buffer


def _sublane_multiple(dtype) -> int:
    """Minimum second-minor tile multiple for a dtype: 8 (32-bit), 16 (16-bit), 32 (8-bit)."""
    bits = jnp.dtype(dtype).itemsize * 8
    return max(8, 256 // bits)


def _smoothed_l1_math(x_f32, t_f32):
    diff = jnp.abs(x_f32 - t_f32)
    small = (0.5 * _SIGMA_SQR) * diff          # |d| <  1/sigma^2 branch (as written in ref code)
    large = (diff - 0.5) * _INV_SIGMA_SQR      # |d| >= 1/sigma^2 branch (mul by reciprocal const)
    return jnp.where(diff < _THRES, small, large)


def _smoothed_l1_kernel(x_ref, t_ref, o_ref):
    # Cast to f32 inside the kernel (VPU slack; avoids an extra HBM pass outside).
    x = x_ref[...].astype(jnp.float32)
    t = t_ref[...].astype(jnp.float32)
    o_ref[...] = _smoothed_l1_math(x, t).astype(o_ref.dtype)


def _smoothed_l1_jnp(x, t, out_dtype):
    """Plain-jnp path for the tiny unaligned tail (and arrays smaller than one tile)."""
    return _smoothed_l1_math(x.astype(jnp.float32), t.astype(jnp.float32)).astype(out_dtype)


def _smoothed_l1_pallas_2d(x2, t2, out_dtype, rows, sub):
    """Run the kernel over an aligned (rows, 128) view."""
    out_itemsize = jnp.dtype(out_dtype).itemsize
    max_itemsize = max(x2.dtype.itemsize, t2.dtype.itemsize, out_itemsize)

    # Dtype-aware block rows targeting ~4 MiB per buffer.
    br = _VMEM_TARGET_BYTES_PER_BUF // (_LANE * max_itemsize)
    br = min(br, rows)
    # Ensure >=2 grid steps when possible so v7x megacore can split the axis.
    if br >= rows and rows >= 2 * sub:
        br = -(-rows // 2)
    br = max(sub, (br // sub) * sub)           # keep block rows a multiple of the sublane tile
    grid = (pl.cdiv(rows, br),)                # last block may be partial; Pallas masks it
    block = (br, _LANE)

    per_step_bytes = br * _LANE * (x2.dtype.itemsize + t2.dtype.itemsize + out_itemsize)
    vmem_limit = max(2 * per_step_bytes + (4 << 20), 16 << 20)   # double-buffered + headroom

    n = rows * _LANE
    bytes_accessed = n * (x2.dtype.itemsize + t2.dtype.itemsize + out_itemsize)

    return pl.pallas_call(
        _smoothed_l1_kernel,
        out_shape=jax.ShapeDtypeStruct((rows, _LANE), out_dtype),
        grid_spec=pltpu.PrefetchScalarGridSpec(
            num_scalar_prefetch=0,
            grid=grid,
            in_specs=[
                pl.BlockSpec(block, lambda i: (i, 0)),
                pl.BlockSpec(block, lambda i: (i, 0)),
            ],
            out_specs=pl.BlockSpec(block, lambda i: (i, 0)),
        ),
        compiler_params=pltpu.CompilerParams(
            dimension_semantics=("parallel",),
            vmem_limit_bytes=int(vmem_limit),
        ),
        cost_estimate=pl.CostEstimate(
            flops=6 * n, transcendentals=0, bytes_accessed=int(bytes_accessed)),
    )(x2, t2)


def smoothed_l1_loss(inputT: jax.Array, target: jax.Array) -> jax.Array:
    """Element-wise smoothed L1 loss; returns array of same shape/dtype as inputT."""
    assert inputT.shape == target.shape, "input and target must have identical shapes"
    orig_shape = inputT.shape
    # NOTE: output dtype follows inputT (faithful to the PyTorch module); compute is f32.
    out_dtype = inputT.dtype

    x = inputT.reshape(-1)
    t = target.reshape(-1)
    n = x.shape[0]

    sub = max(_sublane_multiple(x.dtype), _sublane_multiple(t.dtype), _sublane_multiple(out_dtype))
    align = sub * _LANE
    n_main = (n // align) * align              # aligned prefix handled by the kernel

    if n_main == 0:
        # Entire array smaller than one minimal tile: just do it on the VPU via XLA.
        out_flat = _smoothed_l1_jnp(x, t, out_dtype)
    elif n_main == n:
        rows = n // _LANE
        out_flat = _smoothed_l1_pallas_2d(
            x.reshape(rows, _LANE), t.reshape(rows, _LANE), out_dtype, rows, sub
        ).reshape(-1)
    else:
        # Aligned prefix through the kernel, tiny tail (< sub*128 elements) via jnp,
        # then concatenate -- avoids the pad + slice extra HBM passes.
        rows = n_main // _LANE
        out_main = _smoothed_l1_pallas_2d(
            x[:n_main].reshape(rows, _LANE), t[:n_main].reshape(rows, _LANE),
            out_dtype, rows, sub,
        ).reshape(-1)
        out_tail = _smoothed_l1_jnp(x[n_main:], t[n_main:], out_dtype)
        out_flat = jnp.concatenate([out_main, out_tail])

    return out_flat.reshape(orig_shape)


def _reference(inputT, target):
    diff = jnp.abs(inputT.astype(jnp.float32) - target.astype(jnp.float32))
    out = jnp.where(diff < _THRES, (0.5 * _SIGMA_SQR) * diff, (diff - 0.5) * _INV_SIGMA_SQR)
    return out.astype(inputT.dtype)


if __name__ == "__main__":
    key = jax.random.PRNGKey(0)
    k1, k2 = jax.random.split(key)

    # NCHW-shaped small example (aligned f32 path, >=2 grid steps), values close so
    # both branches fire.
    x = jax.random.normal(k1, (2, 4, 16, 16), dtype=jnp.float32)
    t = x + 0.3 * jax.random.normal(k2, (2, 4, 16, 16), dtype=jnp.float32)

    out = jax.block_until_ready(smoothed_l1_loss(x, t))
    ref = _reference(x, t)
    assert out.shape == x.shape and out.dtype == x.dtype
    assert jnp.allclose(out, ref, atol=1e-6, rtol=1e-6), "f32 mismatch vs reference"

    # Unaligned bf16 path with a non-empty aligned prefix: exercises kernel (bf16,
    # in-kernel upcast) + jnp tail + concatenation.
    xb = jax.random.normal(k1, (3, 1024), dtype=jnp.bfloat16)
    tb = (xb.astype(jnp.float32) + 0.3 * jax.random.normal(k2, (3, 1024))).astype(jnp.bfloat16)
    ob = jax.block_until_ready(smoothed_l1_loss(xb, tb))
    rb = _reference(xb, tb)
    assert ob.shape == xb.shape and ob.dtype == xb.dtype
    assert jnp.allclose(ob.astype(jnp.float32), rb.astype(jnp.float32), atol=2e-2, rtol=2e-2), \
        "bf16 (main+tail) mismatch vs reference"

    # Tiny bf16 array (smaller than one tile): pure jnp fallback path.
    xs = jax.random.normal(k1, (3, 5, 7), dtype=jnp.bfloat16)
    ts = (xs.astype(jnp.float32) + 0.3 * jax.random.normal(k2, (3, 5, 7))).astype(jnp.bfloat16)
    os_ = jax.block_until_ready(smoothed_l1_loss(xs, ts))
    rs = _reference(xs, ts)
    assert os_.shape == xs.shape and os_.dtype == xs.dtype
    assert jnp.allclose(os_.astype(jnp.float32), rs.astype(jnp.float32), atol=2e-2, rtol=2e-2), \
        "bf16 (tiny) mismatch vs reference"

    print("KERNEL_OK")
</pallas_src>

<mosaic_0001>
module attributes {stable_mosaic.version = 11 : i64} {
  func.func @_smoothed_l1_kernel(%arg0: i32, %arg1: memref<8x128xf32, #tpu.memory_space<vmem>>, %arg2: memref<8x128xf32, #tpu.memory_space<vmem>>, %arg3: memref<8x128xf32, #tpu.memory_space<vmem>>) attributes {dimension_semantics = [#tpu.dimension_semantics<parallel>], iteration_bounds = array<i64: 2>, scalar_prefetch = 0 : i64, scratch_operands = 0 : i64, tpu.core_type = #tpu.core_type<tc>, window_params = [{transform_indices = @transform_0, window_bounds = array<i64: 8, 128>}, {transform_indices = @transform_1, window_bounds = array<i64: 8, 128>}, {transform_indices = @transform_2, window_bounds = array<i64: 8, 128>}]} {
    %c0 = arith.constant 0 : index
    %c0_0 = arith.constant 0 : index
    %0 = vector.load %arg1[%c0, %c0_0] : memref<8x128xf32, #tpu.memory_space<vmem>>, vector<8x128xf32>
    %c0_1 = arith.constant 0 : index
    %c0_2 = arith.constant 0 : index
    %1 = vector.load %arg2[%c0_1, %c0_2] : memref<8x128xf32, #tpu.memory_space<vmem>>, vector<8x128xf32>
    %2 = arith.subf %0, %1 : vector<8x128xf32>
    %3 = math.absf %2 : vector<8x128xf32>
    %cst = arith.constant 4.500000e+00 : f32
    %4 = vector.broadcast %cst : f32 to vector<8x128xf32>
    %5 = arith.mulf %4, %3 : vector<8x128xf32>
    %cst_3 = arith.constant 5.000000e-01 : f32
    %6 = vector.broadcast %cst_3 : f32 to vector<8x128xf32>
    %7 = arith.subf %3, %6 : vector<8x128xf32>
    %cst_4 = arith.constant 0.111111112 : f32
    %8 = vector.broadcast %cst_4 : f32 to vector<8x128xf32>
    %9 = arith.mulf %7, %8 : vector<8x128xf32>
    %cst_5 = arith.constant 0.111111112 : f32
    %10 = vector.broadcast %cst_5 : f32 to vector<8x128xf32>
    %11 = arith.cmpf olt, %3, %10 : vector<8x128xf32>
    %12 = arith.select %11, %5, %9 : vector<8x128xi1>, vector<8x128xf32>
    %c0_6 = arith.constant 0 : index
    %c0_7 = arith.constant 0 : index
    %13 = vector.load %arg3[%c0_6, %c0_7] : memref<8x128xf32, #tpu.memory_space<vmem>>, vector<8x128xf32>
    tpu.vector_store %arg3[%c0_6, %c0_7], %12 {strides = array<i32>} : memref<8x128xf32, #tpu.memory_space<vmem>>, vector<8x128xf32>,
    return
  }
  func.func @transform_0(%arg0: i32) -> (i32, i32) {
    %c0_i32 = arith.constant 0 : i32
    %c0_i32_0 = arith.constant 0 : i32
    return %arg0, %c0_i32 : i32, i32
  }
  func.func @transform_1(%arg0: i32) -> (i32, i32) {
    %c0_i32 = arith.constant 0 : i32
    %c0_i32_0 = arith.constant 0 : i32
    return %arg0, %c0_i32 : i32, i32
  }
  func.func @transform_2(%arg0: i32) -> (i32, i32) {
    %c0_i32 = arith.constant 0 : i32
    %c0_i32_0 = arith.constant 0 : i32
    return %arg0, %c0_i32 : i32, i32
  }
}

</mosaic_0001>

<bundles_post_ra>
// kernel: tpu_custom_call.1
= control target key start
LH: loop header
LB: loop body
LE: loop exit
PB: predicated region body
PF: predicated region fallthrough
CT: control target
= control target key end

     0   :  { %7 = vsyncpa [#allocation3], 0  ;;  %s693_s0 = inlined_call_operand.hbm [shape: f32[16,128], index: 0, kind: input, shape index: {}]   ;;  %s694_s1 = inlined_call_operand.hbm [shape: f32[16,128], index: 1, kind: input, shape index: {}]   ;;  %s695_s2 = inlined_call_operand.hbm [shape: f32[16,128], index: 2, kind: output, shape index: {}]  }
   0x1   :  { %9 = vsyncpa [#allocation3 + $0x1], 0 }
   0x2   :  { %10 = vsyncpa [#allocation6], 0 }
   0x3   :  { %12 = vsyncpa [#allocation6 + $0x1], 0 }
   0x4   :  { %13 = vsyncpa [#allocation4], 0 }
   0x5   :  { %15 = vsyncpa [#allocation4 + $0x1], 0  ;;  %s533_s9 = smov 0   ;;  %s535_s10 = smov 0  }
   0x6   :  { %s537_s11 = smov 0   ;;  %s539_s12 = smov 0  }
   0x7 LB: > { %s554_s13 = sadd.s32 4294967295, %s516_s12   ;;  %s319_s14 = sadd.s32 4294967294, %s516_s12   ;;  %s516_s12 = sphi %s539_s12, %s706_s12   ;;  %s512_s11 = sphi %s537_s11, %s705_s11   ;;  %s508_s10 = sphi %s535_s10, %s704_s10   ;;  %s504_s9 = sphi %s533_s9, %s703_s9  }
   0x8   : > { %s558_s15 = sadd.s32 1, %s516_s12   ;;  %s28_s16 = sadd.s32 1, %s512_s11 }
   0x9   : > { %s25_s17 = ssub.s32 %s516_s12, %s558_s15  ;;  %p35_p0 = scmp.ne.s32.totalorder %s512_s11, %s508_s10 }
   0xa   : > { %p26_p1 = scmp.eq.s32.totalorder %s25_s17, 0  ;;  %p36_p2 = scmp.eq.s32.totalorder %s516_s12, 0 }
   0xb   : > { %p41_p3 = scmp.ne.s32.totalorder %s508_s10, %s504_s9  ;;  %p42_p4 = scmp.eq.s32.totalorder %s554_s13, 0 }
   0xc   : > { %s570_s18 = scalar_select %p26_p1, %s512_s11, %s28_s16  }
   0xd   : > { %p572_p5 = por %p36_p2, %p35_p0  ;;  %p576_p6 = por %p42_p4, %p41_p3 }
   0xe   : > { %p91_p7 = scmp.eq.s32.totalorder %s554_s13, 1  ;;  %p97_p8 = scmp.eq.s32.totalorder %s319_s14, 1 }
   0xf   : > { %p352_p10 = scmp.lt.s32.totalorder %s516_s12, 2  ;;  %s592_s23 = sand.u32 1, %s512_s11  }
  0x10   : > { %p583_p11 = por %p91_p7, %p35_p0  ;;  %p587_p12 = por %p97_p8, %p41_p3 }
  0x11   : > { %s323_s24 = sshll.u32 %s516_s12, 3  ;;  %s322_s25 = sshll.u32 %s592_s23, 3 }
  0x12   : > { %s125_s28 = scalar_lea.hbm %s693_s0, %s323_s24  ;;  %s121_s30 = scalar_lea.vmem [#allocation2], %s322_s25 }
  0x13   : > { %s127_s29 = sshll.u32 %s125_s28, 4  ;;  %s129_s3 = sshll.u32 %s121_s30, 4  ;;  %s128_s29 = int_to_ptr.hbm [resolvable:$true] %s127_s29  ;;  %s130_s3 = int_to_ptr.vmem [resolvable:$true] %s129_s3 }
  0x14   : > { %p601_p13 = pnand %p352_p10, %p572_p5  ;;  %p326_p0 = scmp.ge.s32.totalorder %s516_s12, 1 }
  0x15   : > { %p153_p1 = scmp.lt.s32.totalorder %s516_s12, 3  ;;  %s118_s5 = scalar_lea.sflag [#allocation3], %s592_s23 }
  0x16   : > { %s386_s6 = sshra.s32 %s128_s29, 4  ;;  %p390_p3 = pneg %p601_p13  ;;  %s387_s6 = int_to_ptr.hbm [resolvable:$true] %s386_s6 }
  0x17   : > { %s388_s7 = scalar_lea.hbm %s387_s6, 8  ;;  %s393_s16 = scalar_lea.hbm %s693_s0, 16 }
  0x18   : > { %p389_p2 = scmp.ne.s32.totalorder %s387_s6, %s388_s7  ;;  %p394_p5 = scmp.lt.s32.totalorder %s387_s6, %s693_s0 }
  0x19   : > { %p395_p8 = scmp.lt.s32.totalorder %s393_s16, %s388_s7 }
  0x1a   : > { %p391_p4 = pnand %p390_p3, %p389_p2 }
  0x1b   : > { %p396_p10 = por %p395_p8, %p394_p5 }
  0x1c   : > { %p392_p7 = pneg %p391_p4 }
  0x1e   : > { %p397_p9 = pnand %p396_p10, %p392_p7 }
  0x20   : > { %400 = shalt.err (!%p397_p9)
}
  0x21   : > { %344 = dma.hbm_to_vmem [thread:$0]  (!%p601_p13), %s128_s29, 128, %s130_s3, %s118_s5  }
  0x22   : > { %p625_p2 = pnand %p326_p0, %p153_p1  ;;  %s144_s30 = scalar_lea.hbm %s694_s1, %s323_s24 }
  0x23   : > { %s146_s6 = sshll.u32 %s144_s30, 4  ;;  %s140_s7 = scalar_lea.vmem [#allocation5], %s322_s25  ;;  %s147_s6 = int_to_ptr.hbm [resolvable:$true] %s146_s6 }
  0x24   : > { %s148_s8 = sshll.u32 %s140_s7, 4  ;;  %s137_s14 = scalar_lea.sflag [#allocation6], %s592_s23  ;;  %s149_s8 = int_to_ptr.vmem [resolvable:$true] %s148_s8 }
  0x25   : > { %s416_s16 = sshra.s32 %s147_s6, 4  ;;  %s423_s5 = scalar_lea.hbm %s694_s1, 16  ;;  %s417_s16 = int_to_ptr.hbm [resolvable:$true] %s416_s16 }
  0x26   : > { %s418_s17 = scalar_lea.hbm %s417_s16, 8  ;;  %p424_p4 = scmp.lt.s32.totalorder %s417_s16, %s694_s1 }
  0x27   : > { %p419_p9 = scmp.ne.s32.totalorder %s417_s16, %s418_s17  ;;  %p425_p7 = scmp.lt.s32.totalorder %s423_s5, %s418_s17 }
  0x29   : > { %p421_p0 = pnand %p419_p9, %p390_p3  ;;  %p426_p5 = por %p425_p7, %p424_p4 }
  0x2b   : > { %p422_p1 = pneg %p421_p0 }
  0x2d   : > { %p427_p8 = pnand %p426_p5, %p422_p1 }
  0x2f   : > { %430 = shalt.err (!%p427_p8)
}
  0x30   : > { %347 = dma.hbm_to_vmem [thread:$0]  (!%p601_p13), %s147_s6, 128, %s149_s8, %s137_s14  }
  0x31   : > { %157 = sbr.rel (%p625_p2) target bundleno = 72 (0x48), region = 28  ;;  %s647_s23 = sand.u32 (!%p625_p2), 1, %s508_s10  }
  0x32   : > { %s327_s25 = sshll.u32 (!%p625_p2), %s647_s23, 3  ;;  %s160_s27 = scalar_lea.sflag (!%p625_p2), [#allocation3], %s647_s23 }
  0x33   : > { %s163_s28 = scalar_lea.vmem (!%p625_p2), [#allocation2], %s327_s25 }
  0x36   : > { %491 = dma.done.wait (%p576_p6), %s160_s27, 128  }
  0x37   : > { %493 = vsyncadd (%p576_p6), %s160_s27, 4294967168  ;;  %s170_s4 = scalar_lea.sflag [#allocation6], %s647_s23  ;;  %s173_s30 = scalar_lea.vmem [#allocation5], %s327_s25 }
  0x38   : > { %495 = dma.done.wait (%p576_p6), %s170_s4, 128  }
  0x39   : > { %497 = vsyncadd (%p576_p6), %s170_s4, 4294967168  ;;  %s332_s26 = sshll.u32 %s554_s13, 3  ;;  %v200_v0 = vld [vmem:[%s163_s28] sm:$0xff]  ;;  %v201_v1 = vld [vmem:[%s173_s30] sm:$0xff]  ;;  %s199_s14 = scalar_lea.vmem [#allocation7], %s327_s25 }
  0x3a   : > { %v202_v2 = vsub.f32 %v200_v0, %v201_v1  ;;  %s221_s8 = scalar_lea.hbm %s695_s2, %s332_s26  ;;  %s223_s16 = sshll.u32 %s199_s14, 4  ;;  %s224_s16 = int_to_ptr.vmem [resolvable:$true] %s223_s16 }
  0x3b   : > { %s225_s17 = sshll.u32 %s221_s8, 4  ;;  %s211_s13 = scalar_lea.sflag [#allocation4], %s647_s23  ;;  %s226_s17 = int_to_ptr.hbm [resolvable:$true] %s225_s17 }
  0x3c   : > { %v203_v3 = vand.u32 2147483647, %v202_v2  ;;  %s460_s20 = sshra.s32 %s226_s17, 4  ;;  %s466_s19 = scalar_lea.hbm %s695_s2, 16  ;;  %s461_s20 = int_to_ptr.hbm [resolvable:$true] %s460_s20 }
  0x3d   : > { %s462_s29 = scalar_lea.hbm %s461_s20, 8  ;;  %p467_p10 = scmp.lt.s32.totalorder %s461_s20, %s695_s2 }
  0x3e   : > { %v204_v4 = vmul.f32 4.5, %v203_v3  ;;  %v330_v5 = vadd.f32 -0.5, %v203_v3  ;;  %vm207_vm0 = vcmp.lt.f32.partialorder %v203_v3, 0.11111111  ;;  %p463_p6 = scmp.ne.s32.totalorder %s461_s20, %s462_s29  ;;  %p468_p2 = scmp.lt.s32.totalorder %s466_s19, %s462_s29 }
  0x40   : > { %v206_v6 = vmul.f32 0.11111111, %v330_v5  ;;  %p464_p13 = pnand %p463_p6, %p583_p11  ;;  %p469_p9 = por %p468_p2, %p467_p10 }
  0x42   : > { %v208_v7 = vsel %vm207_vm0, %v204_v4, %v206_v6  ;;  %p465_p3 = pneg %p464_p13 }
  0x43   : > { %209 = vst [vmem:[%s199_s14] sm:$0xff] %v208_v7 }
  0x44   : > { %p470_p0 = pnand %p469_p9, %p465_p3 }
  0x46   : > { %473 = shalt.err (!%p470_p0)
}
  0x47   : > { %339 = dma.vmem_to_hbm [thread:$0]  (%p583_p11), %s224_s16, 128, %s226_s17, %s211_s13  }
  0x48 PF: > { %s237_s23 = sand.u32 1, %s504_s9   ;;  %p702_p1 = scmp.ge.s32.totalorder %s516_s12, 2 }
  0x49   : > { %s238_s27 = scalar_lea.sflag [#allocation4], %s237_s23 }
  0x4a   : > { %p349_p4 = pnand %p702_p1, %p587_p12 }
  0x4c   : > { %p350_p7 = pneg %p349_p4 }
  0x4e   : > { %499 = dma.done.wait (%p350_p7), %s238_s27, 128  }
  0x4f   : > { %501 = vsyncadd (%p350_p7), %s238_s27, 4294967168  ;;  %p18_p5 = scmp.ge.s32.totalorder %s558_s15, 4   ;;  %s703_s9 = smov %s508_s10 }
  0x50   : > { %s704_s10 = smov %s512_s11  ;;  %s705_s11 = smov %s570_s18 }
  0x51   : > { %s706_s12 = smov %s558_s15  ;;  %20 = sbr.rel (!%p18_p5) target bundleno = 7 (0x7), region = 86 }
  0x56   :  { %244 = vsyncpa [#allocation3], 1 }
  0x57   :  { %246 = vsyncpa [#allocation3 + $0x1], 1 }
  0x58   :  { %247 = vsyncpa [#allocation6], 1 }
  0x59   :  { %249 = vsyncpa [#allocation6 + $0x1], 1 }
  0x5a   :  { %250 = vsyncpa [#allocation4], 1 }
  0x5b   :  { %252 = vsyncpa [#allocation4 + $0x1], 1 }

</bundles_post_ra>
